<compile_context>
chip_gen: v7x
topology: tpu7x:2x2x1
jax: 0.10.0
libtpu: 0.0.40
codegen_flags: <defaults>
</compile_context>

<pallas_src>
import functools

import jax
import jax.numpy as jnp
from jax import lax
from jax.experimental import pallas as pl
from jax.experimental.pallas import tpu as pltpu


def _cdiv(a, b):
    return -(-a // b)


def _round_up(a, b):
    return _cdiv(a, b) * b


def _downsample_kernel(xm_ref, xh_ref, w0_ref, w1_ref, w2_ref, w3_ref, b_ref,
                       o_ref, *, k2, k3):
    """One (batch n, row-tile t) grid step.

    xm_ref : (1, TH, Whp, C4p)   folded input rows [t*TH, t*TH + TH)
    xh_ref : (1, 1,  Whp, C4p)   halo row t*TH + TH
    wG_ref : (K_g, Coutp)        shift-group weights, g = 2*dh + dw
    b_ref  : (1, Coutp)          f32 bias (zero padded)
    o_ref  : (1, TH, Wop, Coutp) output tile
    """
    _, TH, Wop, Coutp = o_ref.shape
    C4p = xm_ref.shape[-1]
    f32 = jnp.float32

    xm = xm_ref[0]            # (TH, Whp, C4p)
    xh = xh_ref[0]            # (1,  Whp, C4p)

    # Hoisted dw-shift views: the sublane-shift slice is done once per
    # (tensor, dw), not once per (dh, dw) tap group.
    xm0 = xm[:, 0:Wop, :]
    xm1 = xm[:, 1:1 + Wop, :]
    xh0 = xh[:, 0:Wop, :]
    xh1 = xh[:, 1:1 + Wop, :]

    bias = b_ref[...]         # (1, Coutp), broadcasts over (rows, Wop, Coutp)

    # dh = 0 taps: output row r uses folded row r of the main tile.
    M = TH * Wop
    acc = jnp.dot(xm0.reshape(M, C4p), w0_ref[...], preferred_element_type=f32)
    acc = acc + jnp.dot(xm1.reshape(M, C4p), w1_ref[...],
                        preferred_element_type=f32)
    acc = acc.reshape(TH, Wop, Coutp)

    # dh = 1 taps for output rows [0, TH-1): folded rows [1, TH) of the tile.
    if TH > 1:
        Mm = (TH - 1) * Wop
        a1 = jnp.dot(xm0[1:, :, :k2].reshape(Mm, k2), w2_ref[...],
                     preferred_element_type=f32)
        a1 = a1 + jnp.dot(xm1[1:, :, :k3].reshape(Mm, k3), w3_ref[...],
                          preferred_element_type=f32)
        top = acc[:TH - 1] + a1.reshape(TH - 1, Wop, Coutp) + bias
        o_ref[0, pl.ds(0, TH - 1)] = top.astype(o_ref.dtype)

    # dh = 1 taps for output row TH-1: the halo row (no in-kernel concat).
    ah = jnp.dot(xh0[:, :, :k2].reshape(Wop, k2), w2_ref[...],
                 preferred_element_type=f32)
    ah = ah + jnp.dot(xh1[:, :, :k3].reshape(Wop, k3), w3_ref[...],
                      preferred_element_type=f32)
    last = acc[TH - 1:TH] + ah.reshape(1, Wop, Coutp) + bias
    o_ref[0, pl.ds(TH - 1, 1)] = last.astype(o_ref.dtype)


def _vmem_caps():
    cap = 64 << 20                       # conservative default (v7x per-TC)
    try:
        cap = int(getattr(pltpu.get_tpu_info(), "vmem_capacity_bytes", cap))
    except Exception:
        pass
    budget = (cap * 3) // 8              # ~24 MiB on v7x, ~48 MiB on v5e/v6e
    hard = (cap * 5) // 8                # ceiling for the min-M override
    return cap, budget, hard


def _pick_tile_h(Ho, N, Whp, Wop, C4p, group_ks, Coutp,
                 in_itemsize, out_itemsize, budget_bytes, hard_bytes):
    """Output-row tile height TH (need not divide Ho: ceil-div grid with
    zero-padded junk rows that the wrapper slices off)."""
    # VMEM-resident slabs: single-buffered weights + f32 bias.
    w_bytes = sum(k * Coutp for k in group_ks) * in_itemsize + Coutp * 4

    def usage(th):
        in_b = 2 * th * Whp * C4p * in_itemsize           # double-buffered input
        halo_b = 2 * Whp * C4p * in_itemsize              # double-buffered halo
        out_b = 2 * th * Wop * Coutp * out_itemsize       # double-buffered output
        acc_b = 2 * th * Wop * Coutp * 4                  # f32 accumulators
        patch_b = 2 * (th + 1) * Wop * C4p * in_itemsize  # dw-shifted views
        return w_bytes + in_b + halo_b + out_b + acc_b + patch_b

    def largest_fitting(limit):
        best = 1
        for th in range(1, Ho + 1):
            if usage(th) <= limit:
                best = th
        return best

    th = largest_fitting(budget_bytes)
    # Minimum MXU M (v6e/v7x 256x256 systolic array): TH*Wop >= ~512 when it
    # still fits below the hard VMEM ceiling.
    th_floor = min(Ho, _cdiv(512, max(Wop, 1)))
    if th < th_floor:
        th = max(th, min(th_floor, largest_fitting(hard_bytes)))
    # Keep both TensorCores of a 2-TC part busy when the batch is tiny.
    if N * _cdiv(Ho, th) < 2 and Ho >= 2:
        th = _cdiv(Ho, 2)
    return th, usage(th)


def _resident_spec(shape):
    """Constant-index, single-buffered VMEM-resident operand (weights/bias)."""
    nd = len(shape)

    def index_map(n, t):
        return (0,) * nd

    try:
        return pl.BlockSpec(shape, index_map, pipeline_mode=pl.Buffered(1))
    except TypeError:   # older jax without pipeline_mode: fall back to default
        return pl.BlockSpec(shape, index_map)


def downsample(x_nchw, w_oihw, bias, *, compute_dtype=None):
    """Equivalent of: F.pad(x, (0,1,0,1)); Conv2d(C, C, k=3, stride=2, pad=0).

    compute_dtype=jnp.bfloat16 runs the matmuls with bf16 operands (f32 acc).
    """
    N, Cin, H, W = x_nchw.shape
    Cout = w_oihw.shape[0]
    assert w_oihw.shape == (Cout, Cin, 3, 3)

    out_dtype = x_nchw.dtype
    cdt = jnp.dtype(compute_dtype) if compute_dtype is not None else jnp.dtype(out_dtype)
    in_itemsize = cdt.itemsize
    out_itemsize = jnp.dtype(out_dtype).itemsize

    # Conv geometry for pad=(0,1,0,1), k=3, stride=2, VALID.
    Hp, Wp = H + 1, W + 1
    Ho = (Hp - 3) // 2 + 1
    Wo = (Wp - 3) // 2 + 1

    # Lane-dense output channels and folded contraction dim.
    Coutp = _round_up(Cout, 128)
    C4 = 4 * Cin
    C4p = _round_up(C4, 128)

    # K-trim the dh=1 shift groups only when the lane slices are free.
    trim = (Cin % 128 == 0)
    k2 = 2 * Cin if trim else C4p        # (dh=1, dw=0): rp=0 lanes, contiguous
    k3 = Cin if trim else C4p            # (dh=1, dw=1): rp=0, cp=0 lanes
    group_ks = (C4p, C4p, k2, k3)

    # Sublane-aligned output width -> free in-kernel reshapes; +1 col for dw=1.
    Wop = _round_up(Wo, 8)
    Whp = Wop + 1

    # Row tiling (generation-aware VMEM budget, ceil-div grid).
    cap, budget, hard = _vmem_caps()
    TH, usage = _pick_tile_h(Ho, N, Whp, Wop, C4p, group_ks, Coutp,
                             in_itemsize, out_itemsize, budget, hard)
    nT = _cdiv(Ho, TH)
    Hop = nT * TH                        # padded output rows
    Hhp = Hop + 1                        # folded input rows (incl. last halo)
    assert (nT - 1) * TH + TH < Hhp      # halo block index always in bounds

    vmem_limit = int(min(cap - (4 << 20),
                         max(32 << 20, usage + usage // 2 + (4 << 20))))

    # ---- wrapper-side layout plumbing (fused by XLA into one copy each) ----
    x = jnp.transpose(x_nchw, (0, 2, 3, 1))                       # NCHW -> NHWC
    # Zero padding covers the PyTorch (0,1,0,1) pad, evenness, and row tiling;
    # the extra rows/cols only meet zero weights or are sliced off below.
    x = jnp.pad(x, ((0, 0), (0, 2 * Hhp - H), (0, 2 * Whp - W), (0, 0)))
    xf = x.reshape(N, Hhp, 2, Whp, 2, Cin)
    xf = xf.transpose(0, 1, 3, 2, 4, 5).reshape(N, Hhp, Whp, C4)   # lane=(rp,cp,c)
    if C4p > C4:
        xf = jnp.pad(xf, ((0, 0), (0, 0), (0, 0), (0, C4p - C4)))
    xf = xf.astype(cdt)

    # Shift-grouped weights: Wg[(rp,cp,c), co] = w[ky=2dh+rp, kx=2dw+cp, c, co]
    # (zero where ky/kx == 3); dh=1 groups K-trimmed when free.
    w_hwio = jnp.transpose(w_oihw, (2, 3, 1, 0))                   # (3,3,Cin,Cout)
    w_pad = jnp.pad(w_hwio, ((0, 1), (0, 1), (0, 0), (0, Coutp - Cout)))
    w4 = w_pad.reshape(2, 2, 2, 2, Cin, Coutp)                      # (dh,rp,dw,cp,c,co)
    w4 = w4.transpose(0, 2, 1, 3, 4, 5).reshape(4, C4, Coutp)
    if C4p > C4:
        w4 = jnp.pad(w4, ((0, 0), (0, C4p - C4), (0, 0)))
    w4 = w4.astype(cdt)
    w_groups = [w4[g, :group_ks[g], :] for g in range(4)]

    b2 = jnp.pad(bias.astype(jnp.float32), (0, Coutp - Cout)).reshape(1, Coutp)

    kernel = functools.partial(_downsample_kernel, k2=group_ks[2], k3=group_ks[3])

    out = pl.pallas_call(
        kernel,
        out_shape=jax.ShapeDtypeStruct((N, Hop, Wop, Coutp), out_dtype),
        grid=(N, nT),
        in_specs=[
            # main tile: TH folded rows starting at t*TH
            pl.BlockSpec((1, TH, Whp, C4p), lambda n, t: (n, t, 0, 0)),
            # halo: folded row t*TH + TH (block size 1 => element row index)
            pl.BlockSpec((1, 1, Whp, C4p), lambda n, t: (n, (t + 1) * TH, 0, 0)),
            # VMEM-resident, single-buffered weights + bias
            _resident_spec((group_ks[0], Coutp)),
            _resident_spec((group_ks[1], Coutp)),
            _resident_spec((group_ks[2], Coutp)),
            _resident_spec((group_ks[3], Coutp)),
            _resident_spec((1, Coutp)),
        ],
        out_specs=pl.BlockSpec((1, TH, Wop, Coutp), lambda n, t: (n, t, 0, 0)),
        compiler_params=pltpu.CompilerParams(
            dimension_semantics=("parallel", "parallel"),
            vmem_limit_bytes=vmem_limit),
    )(xf, xf, *w_groups, b2)

    out = out[:, :Ho, :Wo, :Cout]                  # drop row/col/channel padding
    return jnp.transpose(out, (0, 3, 1, 2))        # NHWC -> NCHW


def _reference(x_nchw, w_oihw, bias):
    x_p = jnp.pad(x_nchw, ((0, 0), (0, 0), (0, 1), (0, 1)))
    y = lax.conv_general_dilated(
        x_p, w_oihw, window_strides=(2, 2), padding="VALID",
        dimension_numbers=("NCHW", "OIHW", "NCHW"))
    return y + bias[None, :, None, None]


if __name__ == "__main__":
    key = jax.random.PRNGKey(0)
    kx, kw, kb = jax.random.split(key, 3)

    N, C, H, W = 2, 4, 16, 16
    x = jax.random.normal(kx, (N, C, H, W), dtype=jnp.float32)
    # Deterministic synthetic parameters (Conv2d(C, C, 3) shapes).
    w = jax.random.normal(kw, (C, C, 3, 3), dtype=jnp.float32) * 0.1
    b = jax.random.normal(kb, (C,), dtype=jnp.float32) * 0.1

    ref = jax.block_until_ready(_reference(x, w, b))

    # f32 operand path (tight tolerance).
    out = jax.block_until_ready(downsample(x, w, b))
    assert out.shape == (N, C, (H - 2) // 2 + 1, (W - 2) // 2 + 1), out.shape
    assert jnp.allclose(out, ref, atol=1e-5, rtol=1e-5), float(jnp.abs(out - ref).max())

    # bf16 MXU-native operand path (f32 accumulation), looser tolerance.
    out_bf16 = jax.block_until_ready(downsample(x, w, b, compute_dtype=jnp.bfloat16))
    assert jnp.allclose(out_bf16, ref, atol=1e-1, rtol=1e-1), \
        float(jnp.abs(out_bf16 - ref).max())

    print("KERNEL_OK")
</pallas_src>

<mosaic_0001>
module attributes {stable_mosaic.version = 11 : i64} {
  func.func @_downsample_kernel(%arg0: i32, %arg1: i32, %arg2: memref<1x8x9x128xf32, #tpu.memory_space<vmem>>, %arg3: memref<1x1x9x128xf32, #tpu.memory_space<vmem>>, %arg4: memref<128x128xf32, #tpu.memory_space<vmem>>, %arg5: memref<128x128xf32, #tpu.memory_space<vmem>>, %arg6: memref<128x128xf32, #tpu.memory_space<vmem>>, %arg7: memref<128x128xf32, #tpu.memory_space<vmem>>, %arg8: memref<1x128xf32, #tpu.memory_space<vmem>>, %arg9: memref<1x8x8x128xf32, #tpu.memory_space<vmem>>) attributes {dimension_semantics = [#tpu.dimension_semantics<parallel>, #tpu.dimension_semantics<parallel>], iteration_bounds = array<i64: 2, 1>, scalar_prefetch = 0 : i64, scratch_operands = 0 : i64, tpu.core_type = #tpu.core_type<tc>, window_params = [{transform_indices = @transform_0, window_bounds = array<i64: 1, 8, 9, 128>}, {transform_indices = @transform_1, window_bounds = array<i64: 1, 1, 9, 128>}, {pipeline_mode = #tpu.pipeline_mode<synchronous>, transform_indices = @transform_2, window_bounds = array<i64: 128, 128>}, {pipeline_mode = #tpu.pipeline_mode<synchronous>, transform_indices = @transform_3, window_bounds = array<i64: 128, 128>}, {pipeline_mode = #tpu.pipeline_mode<synchronous>, transform_indices = @transform_4, window_bounds = array<i64: 128, 128>}, {pipeline_mode = #tpu.pipeline_mode<synchronous>, transform_indices = @transform_5, window_bounds = array<i64: 128, 128>}, {pipeline_mode = #tpu.pipeline_mode<synchronous>, transform_indices = @transform_6, window_bounds = array<i64: 1, 128>}, {transform_indices = @transform_7, window_bounds = array<i64: 1, 8, 8, 128>}]} {
    %c0 = arith.constant 0 : index
    %c0_0 = arith.constant 0 : index
    %c0_1 = arith.constant 0 : index
    %c0_2 = arith.constant 0 : index
    %0 = vector.load %arg2[%c0, %c0_0, %c0_1, %c0_2] : memref<1x8x9x128xf32, #tpu.memory_space<vmem>>, vector<1x8x9x128xf32>
    %1 = vector.shape_cast %0 : vector<1x8x9x128xf32> to vector<8x9x128xf32>
    %c0_3 = arith.constant 0 : index
    %c0_4 = arith.constant 0 : index
    %c0_5 = arith.constant 0 : index
    %c0_6 = arith.constant 0 : index
    %2 = vector.load %arg3[%c0_3, %c0_4, %c0_5, %c0_6] : memref<1x1x9x128xf32, #tpu.memory_space<vmem>>, vector<1x1x9x128xf32>
    %3 = vector.shape_cast %2 : vector<1x1x9x128xf32> to vector<1x9x128xf32>
    %4 = vector.extract_strided_slice %1 {offsets = [0, 0, 0], sizes = [8, 8, 128], strides = [1, 1, 1]} : vector<8x9x128xf32> to vector<8x8x128xf32>
    %5 = vector.extract_strided_slice %1 {offsets = [0, 1, 0], sizes = [8, 8, 128], strides = [1, 1, 1]} : vector<8x9x128xf32> to vector<8x8x128xf32>
    %6 = vector.extract_strided_slice %3 {offsets = [0, 0, 0], sizes = [1, 8, 128], strides = [1, 1, 1]} : vector<1x9x128xf32> to vector<1x8x128xf32>
    %7 = vector.extract_strided_slice %3 {offsets = [0, 1, 0], sizes = [1, 8, 128], strides = [1, 1, 1]} : vector<1x9x128xf32> to vector<1x8x128xf32>
    %c0_7 = arith.constant 0 : index
    %c0_8 = arith.constant 0 : index
    %8 = vector.load %arg8[%c0_7, %c0_8] : memref<1x128xf32, #tpu.memory_space<vmem>>, vector<1x128xf32>
    %9 = vector.shape_cast %4 : vector<8x8x128xf32> to vector<64x128xf32>
    %c0_9 = arith.constant 0 : index
    %c0_10 = arith.constant 0 : index
    %10 = vector.load %arg4[%c0_9, %c0_10] : memref<128x128xf32, #tpu.memory_space<vmem>>, vector<128x128xf32>
    %cst = arith.constant dense<0.000000e+00> : vector<64x128xf32>
    %11 = tpu.matmul %9, %10, %cst {dimension_numbers = #tpu.dot_dimension_numbers<[1], [0], [0], [1], [0, 0, 1, 1], [], []>} : vector<64x128xf32>, vector<128x128xf32>, vector<64x128xf32> -> vector<64x128xf32>
    %12 = vector.shape_cast %5 : vector<8x8x128xf32> to vector<64x128xf32>
    %c0_11 = arith.constant 0 : index
    %c0_12 = arith.constant 0 : index
    %13 = vector.load %arg5[%c0_11, %c0_12] : memref<128x128xf32, #tpu.memory_space<vmem>>, vector<128x128xf32>
    %cst_13 = arith.constant dense<0.000000e+00> : vector<64x128xf32>
    %14 = tpu.matmul %12, %13, %cst_13 {dimension_numbers = #tpu.dot_dimension_numbers<[1], [0], [0], [1], [0, 0, 1, 1], [], []>} : vector<64x128xf32>, vector<128x128xf32>, vector<64x128xf32> -> vector<64x128xf32>
    %15 = arith.addf %11, %14 : vector<64x128xf32>
    %16 = vector.shape_cast %15 : vector<64x128xf32> to vector<8x8x128xf32>
    %17 = vector.extract_strided_slice %4 {offsets = [1, 0, 0], sizes = [7, 8, 128], strides = [1, 1, 1]} : vector<8x8x128xf32> to vector<7x8x128xf32>
    %18 = vector.shape_cast %17 : vector<7x8x128xf32> to vector<56x128xf32>
    %c0_14 = arith.constant 0 : index
    %c0_15 = arith.constant 0 : index
    %19 = vector.load %arg6[%c0_14, %c0_15] : memref<128x128xf32, #tpu.memory_space<vmem>>, vector<128x128xf32>
    %cst_16 = arith.constant dense<0.000000e+00> : vector<56x128xf32>
    %20 = tpu.matmul %18, %19, %cst_16 {dimension_numbers = #tpu.dot_dimension_numbers<[1], [0], [0], [1], [0, 0, 1, 1], [], []>} : vector<56x128xf32>, vector<128x128xf32>, vector<56x128xf32> -> vector<56x128xf32>
    %21 = vector.extract_strided_slice %5 {offsets = [1, 0, 0], sizes = [7, 8, 128], strides = [1, 1, 1]} : vector<8x8x128xf32> to vector<7x8x128xf32>
    %22 = vector.shape_cast %21 : vector<7x8x128xf32> to vector<56x128xf32>
    %c0_17 = arith.constant 0 : index
    %c0_18 = arith.constant 0 : index
    %23 = vector.load %arg7[%c0_17, %c0_18] : memref<128x128xf32, #tpu.memory_space<vmem>>, vector<128x128xf32>
    %cst_19 = arith.constant dense<0.000000e+00> : vector<56x128xf32>
    %24 = tpu.matmul %22, %23, %cst_19 {dimension_numbers = #tpu.dot_dimension_numbers<[1], [0], [0], [1], [0, 0, 1, 1], [], []>} : vector<56x128xf32>, vector<128x128xf32>, vector<56x128xf32> -> vector<56x128xf32>
    %25 = arith.addf %20, %24 : vector<56x128xf32>
    %26 = vector.extract_strided_slice %16 {offsets = [0, 0, 0], sizes = [7, 8, 128], strides = [1, 1, 1]} : vector<8x8x128xf32> to vector<7x8x128xf32>
    %27 = vector.shape_cast %25 : vector<56x128xf32> to vector<7x8x128xf32>
    %28 = arith.addf %26, %27 : vector<7x8x128xf32>
    %29 = vector.shape_cast %8 : vector<1x128xf32> to vector<1x1x128xf32>
    %30 = vector.broadcast %29 : vector<1x1x128xf32> to vector<7x8x128xf32>
    %31 = arith.addf %28, %30 : vector<7x8x128xf32>
    %c0_20 = arith.constant 0 : index
    %c0_21 = arith.constant 0 : index
    %c0_22 = arith.constant 0 : index
    %c0_23 = arith.constant 0 : index
    %32 = vector.load %arg9[%c0_20, %c0_21, %c0_22, %c0_23] : memref<1x8x8x128xf32, #tpu.memory_space<vmem>>, vector<1x7x8x128xf32>
    %33 = vector.shape_cast %32 : vector<1x7x8x128xf32> to vector<7x8x128xf32>
    %34 = vector.shape_cast %31 : vector<7x8x128xf32> to vector<1x7x8x128xf32>
    tpu.vector_store %arg9[%c0_20, %c0_21, %c0_22, %c0_23], %34 {strides = array<i32>} : memref<1x8x8x128xf32, #tpu.memory_space<vmem>>, vector<1x7x8x128xf32>,
    %35 = vector.shape_cast %6 : vector<1x8x128xf32> to vector<8x128xf32>
    %c0_24 = arith.constant 0 : index
    %c0_25 = arith.constant 0 : index
    %36 = vector.load %arg6[%c0_24, %c0_25] : memref<128x128xf32, #tpu.memory_space<vmem>>, vector<128x128xf32>
    %cst_26 = arith.constant dense<0.000000e+00> : vector<8x128xf32>
    %37 = tpu.matmul %35, %36, %cst_26 {dimension_numbers = #tpu.dot_dimension_numbers<[1], [0], [0], [1], [0, 0, 1, 1], [], []>} : vector<8x128xf32>, vector<128x128xf32>, vector<8x128xf32> -> vector<8x128xf32>
    %38 = vector.shape_cast %7 : vector<1x8x128xf32> to vector<8x128xf32>
    %c0_27 = arith.constant 0 : index
    %c0_28 = arith.constant 0 : index
    %39 = vector.load %arg7[%c0_27, %c0_28] : memref<128x128xf32, #tpu.memory_space<vmem>>, vector<128x128xf32>
    %cst_29 = arith.constant dense<0.000000e+00> : vector<8x128xf32>
    %40 = tpu.matmul %38, %39, %cst_29 {dimension_numbers = #tpu.dot_dimension_numbers<[1], [0], [0], [1], [0, 0, 1, 1], [], []>} : vector<8x128xf32>, vector<128x128xf32>, vector<8x128xf32> -> vector<8x128xf32>
    %41 = arith.addf %37, %40 : vector<8x128xf32>
    %42 = vector.extract_strided_slice %16 {offsets = [7, 0, 0], sizes = [1, 8, 128], strides = [1, 1, 1]} : vector<8x8x128xf32> to vector<1x8x128xf32>
    %43 = vector.shape_cast %41 : vector<8x128xf32> to vector<1x8x128xf32>
    %44 = arith.addf %42, %43 : vector<1x8x128xf32>
    %45 = vector.shape_cast %8 : vector<1x128xf32> to vector<1x1x128xf32>
    %46 = vector.broadcast %45 : vector<1x1x128xf32> to vector<1x8x128xf32>
    %47 = arith.addf %44, %46 : vector<1x8x128xf32>
    %c0_30 = arith.constant 0 : index
    %c7 = arith.constant 7 : index
    %c0_31 = arith.constant 0 : index
    %c0_32 = arith.constant 0 : index
    %48 = vector.load %arg9[%c0_30, %c7, %c0_31, %c0_32] : memref<1x8x8x128xf32, #tpu.memory_space<vmem>>, vector<1x1x8x128xf32>
    %49 = vector.shape_cast %48 : vector<1x1x8x128xf32> to vector<1x8x128xf32>
    %50 = vector.shape_cast %47 : vector<1x8x128xf32> to vector<1x1x8x128xf32>
    tpu.vector_store %arg9[%c0_30, %c7, %c0_31, %c0_32], %50 {strides = array<i32>} : memref<1x8x8x128xf32, #tpu.memory_space<vmem>>, vector<1x1x8x128xf32>,
    return
  }
  func.func @transform_0(%arg0: i32, %arg1: i32) -> (i32, i32, i32, i32) {
    %c0_i32 = arith.constant 0 : i32
    %c0_i32_0 = arith.constant 0 : i32
    %c0_i32_1 = arith.constant 0 : i32
    return %arg0, %arg1, %c0_i32, %c0_i32_0 : i32, i32, i32, i32
  }
  func.func @transform_1(%arg0: i32, %arg1: i32) -> (i32, i32, i32, i32) {
    %c1_i32 = arith.constant 1 : i32
    %0 = arith.addi %arg1, %c1_i32 : i32
    %c8_i32 = arith.constant 8 : i32
    %1 = arith.muli %0, %c8_i32 : i32
    %c0_i32 = arith.constant 0 : i32
    %c0_i32_0 = arith.constant 0 : i32
    %c0_i32_1 = arith.constant 0 : i32
    return %arg0, %1, %c0_i32, %c0_i32_0 : i32, i32, i32, i32
  }
  func.func @transform_2(%arg0: i32, %arg1: i32) -> (i32, i32) {
    %c0_i32 = arith.constant 0 : i32
    %c0_i32_0 = arith.constant 0 : i32
    %c0_i32_1 = arith.constant 0 : i32
    return %c0_i32, %c0_i32_0 : i32, i32
  }
  func.func @transform_3(%arg0: i32, %arg1: i32) -> (i32, i32) {
    %c0_i32 = arith.constant 0 : i32
    %c0_i32_0 = arith.constant 0 : i32
    %c0_i32_1 = arith.constant 0 : i32
    return %c0_i32, %c0_i32_0 : i32, i32
  }
  func.func @transform_4(%arg0: i32, %arg1: i32) -> (i32, i32) {
    %c0_i32 = arith.constant 0 : i32
    %c0_i32_0 = arith.constant 0 : i32
    %c0_i32_1 = arith.constant 0 : i32
    return %c0_i32, %c0_i32_0 : i32, i32
  }
  func.func @transform_5(%arg0: i32, %arg1: i32) -> (i32, i32) {
    %c0_i32 = arith.constant 0 : i32
    %c0_i32_0 = arith.constant 0 : i32
    %c0_i32_1 = arith.constant 0 : i32
    return %c0_i32, %c0_i32_0 : i32, i32
  }
  func.func @transform_6(%arg0: i32, %arg1: i32) -> (i32, i32) {
    %c0_i32 = arith.constant 0 : i32
    %c0_i32_0 = arith.constant 0 : i32
    %c0_i32_1 = arith.constant 0 : i32
    return %c0_i32, %c0_i32_0 : i32, i32
  }
  func.func @transform_7(%arg0: i32, %arg1: i32) -> (i32, i32, i32, i32) {
    %c0_i32 = arith.constant 0 : i32
    %c0_i32_0 = arith.constant 0 : i32
    %c0_i32_1 = arith.constant 0 : i32
    return %arg0, %arg1, %c0_i32, %c0_i32_0 : i32, i32, i32, i32
  }
}

</mosaic_0001>

<bundles_post_ra>
// kernel: tpu_custom_call.1
= control target key start
LH: loop header
LB: loop body
LE: loop exit
PB: predicated region body
PF: predicated region fallthrough
CT: control target
= control target key end

     0   :  { %12 = vsyncpa [#allocation3], 0  ;;  %s2568_s0 = inlined_call_operand.vmem [shape: f32[2,9,9,128], index: 0, kind: input, shape index: {}]   ;;  %s2569_s1 = inlined_call_operand.vmem [shape: f32[2,9,9,128], index: 1, kind: input, shape index: {}]   ;;  %s2570_s2 = inlined_call_operand.vmem [shape: f32[128,128], index: 2, kind: input, shape index: {}]   ;;  %s2571_s3 = inlined_call_operand.vmem [shape: f32[128,128], index: 3, kind: input, shape index: {}]   ;;  %s2572_s4 = inlined_call_operand.vmem [shape: f32[128,128], index: 4, kind: input, shape index: {}]   ;;  %s2573_s5 = inlined_call_operand.vmem [shape: f32[128,128], index: 5, kind: input, shape index: {}]   ;;  %s2574_s6 = inlined_call_operand.vmem [shape: f32[1,128], index: 6, kind: input, shape index: {}]   ;;  %s2575_s7 = inlined_call_operand.hbm [shape: f32[2,8,8,128], index: 7, kind: output, shape index: {}]  }
   0x1   :  { %14 = vsyncpa [#allocation3 + $0x1], 0  ;;  %s2036_s24 = smov 0   ;;  %s2038_s25 = smov 0  }
   0x2   :  { %s2040_s26 = smov 0   ;;  %s2042_s27 = smov 0  }
   0x3   :  { %s2044_s28 = smov 0   ;;  %s2046_s29 = smov 0  }
   0x4 LB: > { %s1254_s30 = sadd.s32 4294967295, %s1988_s29   ;;  %s1255_s8 = sadd.s32 4294967294, %s1988_s29   ;;  %s1988_s29 = sphi %s2046_s29, %s20_s29   ;;  %s1984_s28 = sphi %s2044_s28, %s2582_s28   ;;  %s1980_s27 = sphi %s2042_s27, %s2581_s27   ;;  %s1976_s26 = sphi %s2040_s26, %s2580_s26   ;;  %s1972_s25 = sphi %s2038_s25, %s2579_s25   ;;  %s1968_s24 = sphi %s2036_s24, %s2578_s24  }
   0x5   : > { %s32_s9 = sadd.s32 1, %s1984_s28  ;;  %s206_s10 = sadd.s32 1, %s1976_s26 }
   0x6   : > { %p34_p0 = scmp.ge.s32.totalorder %s32_s9, 2  ;;  %p216_p1 = scmp.ne.s32.totalorder %s1976_s26, %s1972_s25 }
   0x7   : > { %p217_p2 = scmp.eq.s32.totalorder %s1254_s30, 1  ;;  %p222_p3 = scmp.ne.s32.totalorder %s1972_s25, %s1968_s24 }
   0x8   : > { %s2584_s9 = smov (%p34_p0, %s32_s9), 0  ;;  %p223_p5 = scmp.eq.s32.totalorder %s1255_s8, 1 }
   0x9   : > { %p2076_p4 = por %p217_p2, %p216_p1  ;;  %s201_s12 = ssub.s32 %s1984_s28, %s2584_s9 }
   0xa   : > { %p1258_p6 = scmp.ge.s32.totalorder %s1988_s29, 1  ;;  %p204_p7 = scmp.eq.s32.totalorder %s201_s12, 0 }
   0xb   : > { %p2083_p8 = por %p223_p5, %p222_p3  ;;  %p296_p9 = scmp.lt.s32.totalorder %s1988_s29, 3 }
   0xc   : > { %s2089_s14 = scalar_select %p204_p7, %s1976_s26, %s206_s10  }
   0xd   : > { %p297_p10 = pnand %p1258_p6, %p296_p9 }
   0xe   : > { %v468_v0 = vld [vmem:[%s2571_s3] sm:$0xff] (!%p297_p10)  ;;  %v469_v1 = vld [vmem:[%s2571_s3 + $0x8] sm:$0xff] (!%p297_p10)  ;;  %v1990_v3 = vmov (!%p297_p10), 0.0|0.0   ;;  %v470_v6 = vld [vmem:[%s2571_s3 + $0x10] sm:$0xff] (!%p297_p10)  ;;  %vm1991_vm0 = vmmov (!%p297_p10), 0   ;;  %v1992_v8 = vmov (!%p297_p10), 0.0  }
   0xf   : > { %300 = sbr.rel (%p297_p10) target bundleno = 346 (0x15a), region = 48  ;;  %v710_v2 = vld [vmem:[%s2573_s5] sm:$0xff] (!%p297_p10)  ;;  %1728 = vmatprep.subr.bf16.mxu1 (!%p297_p10), %v1990_v3  ;;  %v1664_v4 = vpack.c.bf16 (!%p297_p10), %v469_v1, %v468_v0  ;;  %v711_v5 = vld [vmem:[%s2573_s5 + $0x8] sm:$0xff] (!%p297_p10)  ;;  %v471_v7 = vld [vmem:[%s2571_s3 + $0x18] sm:$0xff] (!%p297_p10)  ;;  %1520 = vmatprep.mubr.msk.f32.mxu1 (!%p297_p10), %vm1991_vm0, %v1992_v8  ;;  %p355_p11 = scmp.lt.s32.totalorder (!%p297_p10), %s1980_s27, 1  ;;  %vm435_vm1 = vcmask (!%p297_p10), 1046528  }
  0x10   : > { %v2113_v9 = vpack.c.bf16 (!%p297_p10), %v711_v5, %v710_v2  ;;  %v1668_v10 = vpack.c.bf16 (!%p297_p10), %v471_v7, %v470_v6  ;;  %v712_v11 = vld [vmem:[%s2573_s5 + $0x10] sm:$0xff] (!%p297_p10)  ;;  %v713_v12 = vld [vmem:[%s2573_s5 + $0x18] sm:$0xff] (!%p297_p10)  ;;  %v472_v13 = vld [vmem:[%s2571_s3 + $0x20] sm:$0xff] (!%p297_p10)  ;;  %s346_s20 = sand.u32 (!%p297_p10), 1, %s1972_s25   ;;  %s1271_s8 = sshll.u32 (!%p297_p10), %s1980_s27, 10 }
  0x11   : > { %1665 = vmatprep.subr.bf16.mxu0 (!%p297_p10), %v1664_v4  ;;  %v473_v14 = vld [vmem:[%s2571_s3 + $0x28] sm:$0xff] (!%p297_p10)  ;;  %v2131_v15 = vpack.c.bf16 (!%p297_p10), %v713_v12, %v712_v11  ;;  %v714_v17 = vld [vmem:[%s2573_s5 + $0x20] sm:$0xff] (!%p297_p10)  ;;  %v474_v19 = vld [vmem:[%s2571_s3 + $0x30] sm:$0xff] (!%p297_p10)  ;;  %s1259_s23 = sshll.u32 (!%p297_p10), %s346_s20, 6  ;;  %s2515_s17 = scalar_lea.hbm (!%p297_p10), %s2575_s7, %s1271_s8 }
  0x12   : > { %1730 = vmatpush3.bf16.msra.mxu1 (!%p297_p10), %v2113_v9  ;;  %1667 = vmatpush3.bf16.msra.mxu0 (!%p297_p10), %v1664_v4  ;;  %v1672_v16 = vpack.c.bf16 (!%p297_p10), %v473_v14, %v472_v13  ;;  %v715_v18 = vld [vmem:[%s2573_s5 + $0x28] sm:$0xff] (!%p297_p10)  ;;  %v475_v20 = vld [vmem:[%s2571_s3 + $0x38] sm:$0xff] (!%p297_p10)  ;;  %v716_v23 = vld [vmem:[%s2573_s5 + $0x30] sm:$0xff] (!%p297_p10)  ;;  %s2501_s30 = scalar_lea.vmem (!%p297_p10), [#allocation2], %s1259_s23  ;;  %s2522_s18 = scalar_lea.sflag (!%p297_p10), [#allocation3], %s346_s20 }
  0x13   : > { %1731 = vmatprep.subr.bf16.mxu1 (!%p297_p10), %v1990_v3  ;;  %1669 = vmatprep.subr.bf16.mxu0 (!%p297_p10), %v1668_v10  ;;  %v2155_v21 = vpack.c.bf16 (!%p297_p10), %v715_v18, %v714_v17  ;;  %v1676_v22 = vpack.c.bf16 (!%p297_p10), %v475_v20, %v474_v19  ;;  %v717_v24 = vld [vmem:[%s2573_s5 + $0x38] sm:$0xff] (!%p297_p10)  ;;  %v476_v25 = vld [vmem:[%s2571_s3 + $0x40] sm:$0xff] (!%p297_p10)  ;;  %v477_v26 = vld [vmem:[%s2571_s3 + $0x48] sm:$0xff] (!%p297_p10) }
  0x14   : > { %v2176_v30 = vpack.c.bf16 (!%p297_p10), %v717_v24, %v716_v23  ;;  %v1680_v32 = vpack.c.bf16 (!%p297_p10), %v477_v26, %v476_v25  ;;  %v718_v33 = vld [vmem:[%s2573_s5 + $0x40] sm:$0xff] (!%p297_p10)  ;;  %v719_v34 = vld [vmem:[%s2573_s5 + $0x48] sm:$0xff] (!%p297_p10)  ;;  %v478_v35 = vld [vmem:[%s2571_s3 + $0x50] sm:$0xff] (!%p297_p10) }
  0x15   : > { %v479_v36 = vld [vmem:[%s2571_s3 + $0x58] sm:$0xff] (!%p297_p10)  ;;  %v2193_v38 = vpack.c.bf16 (!%p297_p10), %v719_v34, %v718_v33  ;;  %v720_v40 = vld [vmem:[%s2573_s5 + $0x50] sm:$0xff] (!%p297_p10)  ;;  %v480_v42 = vld [vmem:[%s2571_s3 + $0x60] sm:$0xff] (!%p297_p10) }
  0x16   : > { %s2128_s22 = scalar_select %p355_p11, %s1980_s27, 1  ;;  %1733 = vmatpush3.bf16.msra.mxu1 %v2131_v15  ;;  %1671 = vmatpush3.bf16.msra.mxu0 %v1668_v10  ;;  %v1684_v39 = vpack.c.bf16 %v479_v36, %v478_v35  ;;  %v721_v41 = vld [vmem:[%s2573_s5 + $0x58] sm:$0xff]  ;;  %v481_v43 = vld [vmem:[%s2571_s3 + $0x68] sm:$0xff]  ;;  %v722_v46 = vld [vmem:[%s2573_s5 + $0x60] sm:$0xff] }
  0x17   : > { %1734 = vmatprep.subr.bf16.mxu1 %v1990_v3  ;;  %1673 = vmatprep.subr.bf16.mxu0 %v1672_v16  ;;  %v2209_v44 = vpack.c.bf16 %v721_v41, %v720_v40  ;;  %v1688_v45 = vpack.c.bf16 %v481_v43, %v480_v42  ;;  %v723_v47 = vld [vmem:[%s2573_s5 + $0x68] sm:$0xff]  ;;  %v482_v48 = vld [vmem:[%s2571_s3 + $0x70] sm:$0xff]  ;;  %v483_v49 = vld [vmem:[%s2571_s3 + $0x78] sm:$0xff]  ;;  %s1993_s27 = smov [#allocation2]  }
  0x18   : > { %s1847_s12 = smul.u32 144, %s2128_s22  ;;  %v2230_v50 = vpack.c.bf16 %v723_v47, %v722_v46  ;;  %v724_v51 = vld [vmem:[%s2573_s5 + $0x70] sm:$0xff]  ;;  %v1692_v52 = vpack.c.bf16 %v483_v49, %v482_v48  ;;  %v725_v53 = vld [vmem:[%s2573_s5 + $0x78] sm:$0xff]  ;;  %v403_v56 = vld [vmem:[%s2570_s2] sm:$0xff] }
  0x19   : > { %v404_v57 = vld [vmem:[%s2570_s2 + $0x8] sm:$0xff]  ;;  %v2253_v61 = vpack.c.bf16 %v725_v53, %v724_v51  ;;  %v694_v0 = vld [vmem:[%s2572_s4] sm:$0xff]  ;;  %v405_v7 = vld [vmem:[%s2570_s2 + $0x10] sm:$0xff] }
  0x1a   : > { %s2152_s21 = scalar_lea.vmem %s2568_s0, %s1847_s12  ;;  %1736 = vmatpush3.bf16.msra.mxu1 %v2155_v21  ;;  %1675 = vmatpush3.bf16.msra.mxu0 %v1672_v16  ;;  %s1270_s15 = sadd.s32 128, %s1847_s12  ;;  %v1696_v2 = vpack.c.bf16 %v404_v57, %v403_v56  ;;  %v695_v4 = vld [vmem:[%s2572_s4 + $0x8] sm:$0xff]  ;;  %v406_v10 = vld [vmem:[%s2570_s2 + $0x18] sm:$0xff]  ;;  %v696_v20 = vld [vmem:[%s2572_s4 + $0x10] sm:$0xff] }
  0x1b   : > { %v2171_v27 = vld [vmem:[%s2152_s21] sm:$0xff]  ;;  %v385_v28 = vld [vmem:[%s2152_s21 + $0x8] sm:$0x1]  ;;  %1737 = vmatprep.subr.bf16.mxu1 %v1990_v3  ;;  %1677 = vmatprep.subr.bf16.mxu0 %v1676_v22  ;;  %s380_s10 = scalar_lea.vmem %s2569_s1, %s1270_s15  ;;  %v2240_v54 = vld [vmem:[%s2152_s21 + $0x10] sm:$0xff]  ;;  %v2282_v16 = vpack.c.bf16 %v695_v4, %v694_v0  ;;  %v1700_v19 = vpack.c.bf16 %v406_v10, %v405_v7  ;;  %s1914_s15 = sshll.u32 %s1993_s27, 4  ;;  %s1915_s15 = int_to_ptr.vmem [resolvable:$false] %s1914_s15 }
  0x1c   : > { %v436_v29 = vrot.slane %v2171_v27, 1  ;;  %v437_v31 = vrot.slane %v385_v28, 1  ;;  %v387_v55 = vld [vmem:[%s2152_s21 + $0x18] sm:$0x1]  ;;  %v2249_v58 = vld [vmem:[%s380_s10] sm:$0xff]  ;;  %v439_v62 = vrot.slane %v2240_v54, 1 }
  0x1d   : > { %v401_v59 = vld [vmem:[%s380_s10 + $0x8] sm:$0x1]  ;;  %v987_v60 = vrot.slane %v2249_v58, 1  ;;  %v440_v63 = vrot.slane %v387_v55, 1  ;;  %v2264_v5 = vld [vmem:[%s2152_s21 + $0x20] sm:$0xff]  ;;  %v2277_v12 = vld [vmem:[%s2152_s21 + $0x30] sm:$0xff] }
  0x1e   : > { %v438_v37 = vsel %vm435_vm1, %v436_v29, %v437_v31  ;;  %1739 = vmatpush3.bf16.msra.mxu1 %v2176_v30  ;;  %1679 = vmatpush3.bf16.msra.mxu0 %v1676_v22  ;;  %v988_v1 = vrot.slane %v401_v59, 1  ;;  %v389_v6 = vld [vmem:[%s2152_s21 + $0x28] sm:$0x1]  ;;  %v391_v13 = vld [vmem:[%s2152_s21 + $0x38] sm:$0x1]  ;;  %v442_v17 = vrot.slane %v2264_v5, 1 }
  0x1f   : > { %1432 = vmatprep.mubr.f32.mxu0 %v438_v37  ;;  %1740 = vmatprep.subr.bf16.mxu1 %v1990_v3  ;;  %v441_v14 = vsel %vm435_vm1, %v439_v62, %v440_v63  ;;  %v443_v18 = vrot.slane %v389_v6, 1  ;;  %v697_v22 = vld [vmem:[%s2572_s4 + $0x18] sm:$0xff]  ;;  %v407_v23 = vld [vmem:[%s2570_s2 + $0x20] sm:$0xff]  ;;  %v408_v24 = vld [vmem:[%s2570_s2 + $0x28] sm:$0xff]  ;;  %v445_v25 = vrot.slane %v2277_v12, 1  ;;  %v446_v26 = vrot.slane %v391_v13, 1 }
  0x20   : > { %1681 = vmatprep.subr.bf16.mxu0 %v1680_v32  ;;  %v2274_v11 = vsel %vm435_vm1, %v987_v60, %v988_v1  ;;  %v2300_v28 = vld [vmem:[%s2152_s21 + $0x40] sm:$0xff]  ;;  %v393_v29 = vld [vmem:[%s2152_s21 + $0x48] sm:$0x1]  ;;  %v2304_v31 = vld [vmem:[%s2152_s21 + $0x50] sm:$0xff]  ;;  %v2308_v33 = vpack.c.bf16 %v697_v22, %v696_v20  ;;  %v1704_v37 = vpack.c.bf16 %v408_v24, %v407_v23  ;;  %s1916_s23 = scalar_lea.vmem %s1915_s15, 2048 }
  0x21   : > { %v444_v34 = vsel %vm435_vm1, %v442_v17, %v443_v18  ;;  %v698_v35 = vld [vmem:[%s2572_s4 + $0x20] sm:$0xff]  ;;  %v699_v36 = vld [vmem:[%s2572_s4 + $0x28] sm:$0xff]  ;;  %v448_v40 = vrot.slane %v2300_v28, 1  ;;  %v449_v41 = vrot.slane %v393_v29, 1  ;;  %v2323_v42 = vld [vmem:[%s2152_s21 + $0x70] sm:$0xff]  ;;  %v451_v47 = vrot.slane %v2304_v31, 1 }
  0x22   : > { %1742 = vmatpush3.bf16.msra.mxu1 %v2193_v38  ;;  %1683 = vmatpush3.bf16.msra.mxu0 %v1680_v32  ;;  %v395_v32 = vld [vmem:[%s2152_s21 + $0x58] sm:$0x1]  ;;  %v2334_v49 = vld [vmem:[%s2152_s21 + $0x60] sm:$0xff]  ;;  %v397_v51 = vld [vmem:[%s2152_s21 + $0x68] sm:$0x1]  ;;  %v457_v53 = vrot.slane %v2323_v42, 1 }
  0x23   : > { %1743 = vmatprep.subr.bf16.mxu1 %v1990_v3  ;;  %1685 = vmatprep.subr.bf16.mxu0 %v1684_v39  ;;  %v399_v43 = vld [vmem:[%s2152_s21 + $0x78] sm:$0x1]  ;;  %v452_v48 = vrot.slane %v395_v32, 1  ;;  %v700_v57 = vld [vmem:[%s2572_s4 + $0x30] sm:$0xff]  ;;  %v450_v60 = vsel %vm435_vm1, %v448_v40, %v449_v41  ;;  %v454_v62 = vrot.slane %v2334_v49, 1  ;;  %v455_v63 = vrot.slane %v397_v51, 1 }
  0x24   : > { %v410_v46 = vld [vmem:[%s2570_s2 + $0x38] sm:$0xff]  ;;  %v458_v55 = vrot.slane %v399_v43, 1  ;;  %v411_v0 = vld [vmem:[%s2570_s2 + $0x40] sm:$0xff]  ;;  %v412_v1 = vld [vmem:[%s2570_s2 + $0x48] sm:$0xff]  ;;  %s1151_s21 = sshll.u32 %s2501_s30, 4  ;;  %s2517_s21 = int_to_ptr.vmem [resolvable:$true] %s1151_s21 }
  0x25   : > { %v701_v59 = vld [vmem:[%s2572_s4 + $0x38] sm:$0xff]  ;;  %v1712_v7 = vpack.c.bf16 %v412_v1, %v411_v0  ;;  %v702_v10 = vld [vmem:[%s2572_s4 + $0x40] sm:$0xff]  ;;  %v703_v13 = vld [vmem:[%s2572_s4 + $0x48] sm:$0xff]  ;;  %s1910_s19 = scalar_lea.vmem %s2517_s21, 1024  ;;  %p1917_p1 = scmp.lt.s32.totalorder %s2517_s21, %s1915_s15 }
  0x26   : > { %1745 = vmatpush3.bf16.msra.mxu1 %v2209_v44  ;;  %1687 = vmatpush3.bf16.msra.mxu0 %v1684_v39  ;;  %v409_v39 = vld [vmem:[%s2570_s2 + $0x30] sm:$0xff]  ;;  %v2360_v4 = vpack.c.bf16 %v701_v59, %v700_v57  ;;  %v459_v6 = vsel %vm435_vm1, %v457_v53, %v458_v55  ;;  %v414_v18 = vld [vmem:[%s2570_s2 + $0x58] sm:$0xff]  ;;  %v415_v24 = vld [vmem:[%s2570_s2 + $0x60] sm:$0xff]  ;;  %p1911_p12 = scmp.ne.s32.totalorder %s2517_s21, %s1910_s19  ;;  %p1918_p2 = scmp.lt.s32.totalorder %s1916_s23, %s1910_s19 }
  0x27   : > { %1746 = vmatprep.subr.bf16.mxu1 %v1990_v3  ;;  %1689 = vmatprep.subr.bf16.mxu0 %v1688_v45  ;;  %v1708_v56 = vpack.c.bf16 %v410_v46, %v409_v39  ;;  %v413_v17 = vld [vmem:[%s2570_s2 + $0x50] sm:$0xff]  ;;  %v705_v23 = vld [vmem:[%s2572_s4 + $0x58] sm:$0xff]  ;;  %v706_v32 = vld [vmem:[%s2572_s4 + $0x60] sm:$0xff] }
  0x28   : > { %v1716_v20 = vpack.c.bf16 %v414_v18, %v413_v17  ;;  %v704_v22 = vld [vmem:[%s2572_s4 + $0x50] sm:$0xff]  ;;  %v709_v40 = vld [vmem:[%s2572_s4 + $0x78] sm:$0xff]  ;;  %p1912_p13 = pnand %p1911_p12, %p2076_p4  ;;  %p1919_p3 = por %p1918_p2, %p1917_p1 }
  0x29   : > { %v708_v39 = vld [vmem:[%s2572_s4 + $0x70] sm:$0xff] }
  0x2a   : > { %1748 = vmatpush3.bf16.msra.mxu1 %v2230_v50  ;;  %1691 = vmatpush3.bf16.msra.mxu0 %v1688_v45  ;;  %v447_v45 = vsel %vm435_vm1, %v445_v25, %v446_v26  ;;  %v416_v25 = vld [vmem:[%s2570_s2 + $0x68] sm:$0xff]  ;;  %v2399_v26 = vpack.c.bf16 %v705_v23, %v704_v22  ;;  %v1774_v41 = vpack.c.bf16 %v709_v40, %v708_v39  ;;  %p1913_p0 = pneg %p1912_p13 }
  0x2b   : > { %1749 = vmatprep.subr.bf16.mxu1 %v1990_v3  ;;  %1693 = vmatprep.subr.bf16.mxu0 %v1692_v52  ;;  %v1720_v29 = vpack.c.bf16 %v416_v25, %v415_v24 }
  0x2c   : > { %p1920_p5 = pnand %p1919_p3, %p1913_p0 }
  0x2e   : > { %1751 = vmatpush3.bf16.msra.mxu1 %v2253_v61  ;;  %1695 = vmatpush3.bf16.msra.mxu0 %v1692_v52  ;;  %v2338_v52 = vpack.c.bf16 %v699_v36, %v698_v35  ;;  %v418_v35 = vld [vmem:[%s2570_s2 + $0x78] sm:$0xff] }
  0x2f   : > { %1752 = vmatprep.subr.bf16.mxu1 %v1990_v3  ;;  %1697 = vmatprep.subr.bf16.mxu0 %v1696_v2 }
  0x31   : > { %1521 = vmatmul.mubr.f32.vlgmr.msra.gmra.mrb[0].mxu1 %v441_v14  ;;  %1433 = vmatmul.mubr.f32.vlgmr.msra.gmra.mrb[0].mxu0 %v441_v14  ;;  %v456_v14 = vsel %vm435_vm1, %v454_v62, %v455_v63 }
  0x32   : > { %1754 = vmatpush3.bf16.msra.mxu1 %v2282_v16  ;;  %1699 = vmatpush3.bf16.msra.mxu0 %v1696_v2  ;;  %v453_v2 = vsel %vm435_vm1, %v451_v47, %v452_v48 }
  0x33   : > { %1755 = vmatprep.subr.bf16.mxu1 %v1990_v3  ;;  %1701 = vmatprep.subr.bf16.mxu0 %v1700_v19 }
  0x34   : > { %1523 = vmatprep.mubr.msk.f32.mxu1 %vm1991_vm0, %v1992_v8  ;;  %1435 = vmatprep.mubr.f32.mxu0 %v444_v34 }
  0x35   : > { %1524 = vmatmul.mubr.f32.gmra.mrb[2].mxu1 %v444_v34  ;;  %1436 = vmatmul.mubr.f32.gmra.mrb[2].mxu0 %v447_v45  ;;  %v707_v34 = vld [vmem:[%s2572_s4 + $0x68] sm:$0xff] }
  0x36   : > { %1757 = vmatpush3.bf16.msra.mxu1 %v2308_v33  ;;  %1703 = vmatpush3.bf16.msra.mxu0 %v1700_v19  ;;  %v2380_v19 = vpack.c.bf16 %v703_v13, %v702_v10  ;;  %v2417_v36 = vpack.c.bf16 %v707_v34, %v706_v32 }
  0x37   : > { %1758 = vmatprep.subr.bf16.mxu1 %v1990_v3  ;;  %1705 = vmatprep.subr.bf16.mxu0 %v1704_v37 }
  0x38   : > { %1526 = vmatprep.mubr.msk.f32.mxu1 %vm1991_vm0, %v1992_v8  ;;  %1438 = vmatprep.mubr.f32.mxu0 %v450_v60 }
  0x39   : > { %1527 = vmatmul.mubr.f32.gmra.mrb[4].mxu1 %v447_v45  ;;  %1439 = vmatmul.mubr.f32.gmra.mrb[4].mxu0 %v453_v2 }
  0x3a   : > { %1760 = vmatpush3.bf16.msra.mxu1 %v2338_v52  ;;  %1707 = vmatpush3.bf16.msra.mxu0 %v1704_v37 }
  0x3b   : > { %1761 = vmatprep.subr.bf16.mxu1 %v1990_v3  ;;  %1709 = vmatprep.subr.bf16.mxu0 %v1708_v56 }
  0x3c   : > { %1529 = vmatprep.mubr.msk.f32.mxu1 %vm1991_vm0, %v1992_v8  ;;  %1441 = vmatprep.mubr.f32.mxu0 %v456_v14 }
  0x3d   : > { %1530 = vmatmul.mubr.f32.gmra.mrb[6].mxu1 %v450_v60  ;;  %1442 = vmatmul.mubr.f32.gmra.mrb[6].mxu0 %v459_v6 }
  0x3e   : > { %1763 = vmatpush3.bf16.msra.mxu1 %v2360_v4  ;;  %1711 = vmatpush3.bf16.msra.mxu0 %v1708_v56 }
  0x3f   : > { %1764 = vmatprep.subr.bf16.mxu1 %v1990_v3  ;;  %1713 = vmatprep.subr.bf16.mxu0 %v1712_v7 }
  0x40   : > { %1532 = vmatprep.mubr.msk.f32.mxu1 %vm1991_vm0, %v1992_v8  ;;  %1476 = vmatprep.mubr.f32.mxu0 %v2171_v27  ;;  %v417_v27 = vld [vmem:[%s2570_s2 + $0x70] sm:$0xff] }
  0x41   : > { %1533 = vmatmul.mubr.f32.gmra.mrb[8].mxu1 %v453_v2  ;;  %v1724_v37 = vpack.c.bf16 %v418_v35, %v417_v27 }
  0x42   : > { %1766 = vmatpush3.bf16.msra.mxu1 %v2380_v19  ;;  %1715 = vmatpush3.bf16.msra.mxu0 %v1712_v7 }
  0x43   : > { %1767 = vmatprep.subr.bf16.mxu1 %v1990_v3  ;;  %1717 = vmatprep.subr.bf16.mxu0 %v1716_v20 }
  0x44   : > { %1535 = vmatprep.mubr.msk.f32.mxu1 %vm1991_vm0, %v1992_v8 }
  0x45   : > { %1536 = vmatmul.mubr.f32.gmra.mrb[10].mxu1 %v456_v14 }
  0x46   : > { %1769 = vmatpush3.bf16.msra.mxu1 %v2399_v26  ;;  %1719 = vmatpush3.bf16.msra.mxu0 %v1716_v20 }
  0x47   : > { %1770 = vmatprep.subr.bf16.mxu1 %v1990_v3  ;;  %1721 = vmatprep.subr.bf16.mxu0 %v1720_v29 }
  0x48   : > { %1538 = vmatprep.mubr.msk.f32.mxu1 %vm1991_vm0, %v1992_v8 }
  0x49   : > { %1539 = vmatmul.mubr.f32.gmra.mrb[12].mxu1 %v459_v6 }
  0x4a   : > { %1772 = vmatpush3.bf16.msra.mxu1 %v2417_v36  ;;  %1723 = vmatpush3.bf16.msra.mxu0 %v1720_v29 }
  0x4b   : > { %1773 = vmatprep.subr.bf16.mxu1 %v1990_v3  ;;  %1725 = vmatprep.subr.bf16.mxu0 %v1724_v37 }
  0x4c   : > { %1573 = vmatprep.mubr.msk.f32.mxu1 %vm1991_vm0, %v1992_v8 }
  0x4e   : > { %1775 = vmatpush3.bf16.msra.mxu1 %v1774_v41  ;;  %1727 = vmatpush3.bf16.msra.mxu0 %v1724_v37 }
  0x4f   : > { %1776 = vmatprep.subr.bf16.mxu1 %v1990_v3  ;;  %1800 = vmatprep.subr.bf16.mxu0 %v1990_v3 }
  0x51   : > { %1574 = vmatmul.mubr.f32.vlgmr.msra.gmra.mrb[0].mxu1 %v2240_v54  ;;  %1477 = vmatmul.mubr.f32.vlgmr.msra.gmra.mrb[0].mxu0 %v2240_v54 }
  0x52   : > { %1778 = vmatpush3.bf16.msra.mxu1 %v2113_v9  ;;  %1802 = vmatpush3.bf16.msra.mxu0 %v2282_v16 }
  0x53   : > { %1576 = vmatprep.mubr.msk.f32.mxu1 %vm1991_vm0, %v1992_v8  ;;  %1479 = vmatprep.mubr.f32.mxu0 %v2264_v5 }
  0x54   : > { %1779 = vmatprep.subr.bf16.mxu1 %v1990_v3  ;;  %1803 = vmatprep.subr.bf16.mxu0 %v1990_v3 }
  0x55   : > { %1577 = vmatmul.mubr.f32.gmra.mrb[2].mxu1 %v2264_v5  ;;  %1480 = vmatmul.mubr.f32.gmra.mrb[2].mxu0 %v2277_v12 }
  0x56   : > { %1781 = vmatpush3.bf16.msra.mxu1 %v2131_v15  ;;  %1805 = vmatpush3.bf16.msra.mxu0 %v2308_v33 }
  0x57   : > { %1579 = vmatprep.mubr.msk.f32.mxu1 %vm1991_vm0, %v1992_v8  ;;  %1482 = vmatprep.mubr.f32.mxu0 %v2300_v28 }
  0x58   : > { %1782 = vmatprep.subr.bf16.mxu1 %v1990_v3  ;;  %1806 = vmatprep.subr.bf16.mxu0 %v1990_v3 }
  0x59   : > { %1580 = vmatmul.mubr.f32.gmra.mrb[4].mxu1 %v2277_v12  ;;  %1483 = vmatmul.mubr.f32.gmra.mrb[4].mxu0 %v2304_v31 }
  0x5a   : > { %1784 = vmatpush3.bf16.msra.mxu1 %v2155_v21  ;;  %1808 = vmatpush3.bf16.msra.mxu0 %v2338_v52 }
  0x5b   : > { %1582 = vmatprep.mubr.msk.f32.mxu1 %vm1991_vm0, %v1992_v8  ;;  %1485 = vmatprep.mubr.f32.mxu0 %v2334_v49 }
  0x5c   : > { %1785 = vmatprep.subr.bf16.mxu1 %v1990_v3  ;;  %1809 = vmatprep.subr.bf16.mxu0 %v1990_v3 }
  0x5d   : > { %1583 = vmatmul.mubr.f32.gmra.mrb[6].mxu1 %v2300_v28  ;;  %1486 = vmatmul.mubr.f32.gmra.mrb[6].mxu0 %v2323_v42 }
  0x5e   : > { %1787 = vmatpush3.bf16.msra.mxu1 %v2176_v30  ;;  %1811 = vmatpush3.bf16.msra.mxu0 %v2360_v4 }
  0x5f   : > { %1585 = vmatprep.mubr.msk.f32.mxu1 %vm1991_vm0, %v1992_v8  ;;  %1788 = vmatprep.subr.bf16.mxu1 %v1990_v3 }
  0x60   : > { %1812 = vmatprep.subr.bf16.mxu0 %v1990_v3  ;;  %1661 = vmatprep.mubr.msk.f32.mxu0 %vm1991_vm0, %v1992_v8 }
  0x61   : > { %1586 = vmatmul.mubr.f32.gmra.mrb[8].mxu1 %v2304_v31 }
  0x62   : > { %1790 = vmatpush3.bf16.msra.mxu1 %v2193_v38  ;;  %1814 = vmatpush3.bf16.msra.mxu0 %v2380_v19 }
  0x63   : > { %1588 = vmatprep.mubr.msk.f32.mxu1 %vm1991_vm0, %v1992_v8  ;;  %1791 = vmatprep.subr.bf16.mxu1 %v1990_v3 }
  0x64   : > { %1815 = vmatprep.subr.bf16.mxu0 %v1990_v3 }
  0x65   : > { %1589 = vmatmul.mubr.f32.gmra.mrb[10].mxu1 %v2334_v49 }
  0x66   : > { %1793 = vmatpush3.bf16.msra.mxu1 %v2209_v44  ;;  %1817 = vmatpush3.bf16.msra.mxu0 %v2399_v26 }
  0x67   : > { %1591 = vmatprep.mubr.msk.f32.mxu1 %vm1991_vm0, %v1992_v8  ;;  %1794 = vmatprep.subr.bf16.mxu1 %v1990_v3 }
  0x68   : > { %1818 = vmatprep.subr.bf16.mxu0 %v1990_v3 }
  0x69   : > { %1592 = vmatmul.mubr.f32.gmra.mrb[12].mxu1 %v2323_v42 }
  0x6a   : > { %1796 = vmatpush3.bf16.msra.mxu1 %v2230_v50  ;;  %1820 = vmatpush3.bf16.msra.mxu0 %v2417_v36 }
  0x6b   : > { %1797 = vmatprep.subr.bf16.mxu1 %v1990_v3  ;;  %1821 = vmatprep.subr.bf16.mxu0 %v1990_v3  ;;  %v1262_v3 = vld [vmem:[%s2574_s6] ss:$0 sm:$0xff] }
  0x6c   : > { %1626 = vmatprep.mubr.msk.f32.mxu1 %vm1991_vm0, %v1992_v8 }
  0x6e   : > { %1799 = vmatpush3.bf16.msra.mxu1 %v2253_v61  ;;  %1823 = vmatpush3.bf16.msra.mxu0 %v1774_v41 }
  0x71   : > { %1627 = vmatmul.mubr.f32.vlgmr.msra.gmra.mrb[14].mxu1 %v2274_v11  ;;  %1662 = vmatmul.mubr.f32.vlgmr.msra.gmra.mrb[8].mxu0 %v2249_v58 }
 0x124   : > { %v892_v9 = vpop.f32.mrb[0].mxu1  ;;  %v1478_v15 = vpop.f32.mrb[0].mxu0 }
 0x125   : > { %v1575_v21 = vpop.f32.mrb[1].mxu1  ;;  %v655_v30 = vpop.f32.mrb[1].mxu0 }
 0x126   : > { %v926_v38 = vadd.f32 %v892_v9, %v655_v30 }
 0x128   : > { %v939_v8 = vadd.f32 %v1262_v3, %v926_v38  ;;  %v897_v44 = vpop.f32.mrb[2].mxu1  ;;  %v1481_v50 = vpop.f32.mrb[2].mxu0 }
 0x129   : > { %v927_v54 = vadd.f32 %v1478_v15, %v897_v44  ;;  %v1578_v61 = vpop.f32.mrb[3].mxu1  ;;  %v665_v5 = vpop.f32.mrb[3].mxu0 }
 0x12a   : > { %946 = vst [vmem:[%s2501_s30] sm:$0xff] %v939_v8 }
 0x12b   : > { %v940_v58 = vadd.f32 %v1262_v3, %v927_v54 }
 0x12c   : > { %v902_v11 = vpop.f32.mrb[4].mxu1  ;;  %v1484_v12 = vpop.f32.mrb[4].mxu0 }
 0x12d   : > { %947 = vst [vmem:[%s2501_s30 + $0x8] sm:$0xff] %v940_v58  ;;  %v928_v16 = vadd.f32 %v902_v11, %v665_v5  ;;  %v1581_v28 = vpop.f32.mrb[5].mxu1  ;;  %v675_v31 = vpop.f32.mrb[5].mxu0 }
 0x12f   : > { %v941_v33 = vadd.f32 %v1262_v3, %v928_v16 }
 0x130   : > { %v907_v42 = vpop.f32.mrb[6].mxu1  ;;  %v1487_v43 = vpop.f32.mrb[6].mxu0 }
 0x131   : > { %948 = vst [vmem:[%s2501_s30 + $0x10] sm:$0xff] %v941_v33  ;;  %v929_v45 = vadd.f32 %v1481_v50, %v907_v42  ;;  %v1584_v46 = vpop.f32.mrb[7].mxu1  ;;  %v685_v47 = vpop.f32.mrb[7].mxu0 }
 0x133   : > { %v942_v48 = vadd.f32 %v1262_v3, %v929_v45 }
 0x134   : > { %v912_v49 = vpop.f32.mrb[8].mxu1 }
 0x135   : > { %949 = vst [vmem:[%s2501_s30 + $0x18] sm:$0xff] %v942_v48  ;;  %v930_v51 = vadd.f32 %v912_v49, %v675_v31  ;;  %v1587_v52 = vpop.f32.mrb[9].mxu1 }
 0x137   : > { %v943_v53 = vadd.f32 %v1262_v3, %v930_v51 }
 0x138   : > { %v917_v55 = vpop.f32.mrb[10].mxu1 }
 0x139   : > { %950 = vst [vmem:[%s2501_s30 + $0x20] sm:$0xff] %v943_v53  ;;  %v931_v56 = vadd.f32 %v1484_v12, %v917_v55  ;;  %v1590_v57 = vpop.f32.mrb[11].mxu1 }
 0x13b   : > { %v944_v59 = vadd.f32 %v1262_v3, %v931_v56 }
 0x13c   : > { %v922_v60 = vpop.f32.mrb[12].mxu1 }
 0x13d   : > { %951 = vst [vmem:[%s2501_s30 + $0x28] sm:$0xff] %v944_v59  ;;  %v932_v62 = vadd.f32 %v922_v60, %v685_v47  ;;  %v1593_v63 = vpop.f32.mrb[13].mxu1 }
 0x13f   : > { %v945_v0 = vadd.f32 %v1262_v3, %v932_v62 }
 0x141   : > { %952 = vst [vmem:[%s2501_s30 + $0x30] sm:$0xff] %v945_v0 }
 0x144   : > { %v1057_v1 = vpop.f32.mrb[14].mxu1  ;;  %v1127_v2 = vpop.f32.mrb[8].mxu0 }
 0x145   : > { %v1628_v4 = vpop.f32.mrb[15].mxu1  ;;  %v1128_v6 = vadd.f32 %v1127_v2, %v1057_v1  ;;  %v1663_v7 = vpop.f32.mrb[9].mxu0 }
 0x147   : > { %v1131_v10 = vadd.f32 %v1487_v43, %v1128_v6 }
 0x149   : > { %v1132_v13 = vadd.f32 %v1262_v3, %v1131_v10 }
 0x14b   : > { %1263 = vst [vmem:[%s2501_s30 + $0x38] sm:$0xff] %v1132_v13 }
 0x14c   : > { %1923 = shalt.err (!%p1920_p5)
}
 0x14d   : > { %s1924_s20 = scalar_lea.hbm %s2515_s17, 1024  ;;  %s1928_s30 = scalar_lea.hbm %s2575_s7, 2048 }
 0x14e   : > { %p1925_p6 = scmp.ne.s32.totalorder %s2515_s17, %s1924_s20  ;;  %p1929_p10 = scmp.lt.u32.totalorder %s2515_s17, %s2575_s7 }
 0x14f   : > { %p1930_p11 = scmp.lt.u32.totalorder %s1928_s30, %s1924_s20  ;;  %p1932_p13 = scmp.lt.u32.totalorder %s1924_s20, %s2515_s17 }
 0x150   : > { %p1926_p7 = pnand %p1925_p6, %p2076_p4 }
 0x151   : > { %p1931_p12 = por %p1930_p11, %p1929_p10 }
 0x152   : > { %p1927_p9 = pneg %p1926_p7 }
 0x153   : > { %p1933_p0 = por %p1932_p13, %p1931_p12 }
 0x155   : > { %p1934_p1 = pnand %p1933_p0, %p1927_p9 }
 0x157   : > { %1937 = shalt.err (!%p1934_p1)
}
 0x158   : > { %s1994_s16 = smov 128   ;;  %s1995_s19 = smov 8  }
 0x159   : > { %1849 = dma.vmem_to_hbm [thread:$0]  (%p2076_p4), %s2517_s21, 1024, %s2515_s17, %s2522_s18, %s1994_s16, %s1994_s16, %s1995_s19  }
 0x15a PF: > { %p1856_p2 = scmp.ge.s32.totalorder %s1988_s29, 2  ;;  %s1166_s27 = sand.u32 1, %s1968_s24  }
 0x15b   : > { %s1167_s15 = scalar_lea.sflag [#allocation3], %s1166_s27 }
 0x15c   : > { %p1852_p3 = pnand %p1856_p2, %p2083_p8 }
 0x15e   : > { %1963 = dma.done.wait (!%p1852_p3), %s1167_s15, 1024  }
 0x15f   : > { %1965 = vsyncadd (!%p1852_p3), %s1167_s15, 4294966272  ;;  %s20_s29 = sadd.s32 1, %s1988_s29   ;;  %s2578_s24 = smov %s1972_s25 }
 0x160   : > { %p17_p5 = scmp.ge.s32.totalorder %s20_s29, 4   ;;  %s2579_s25 = smov %s1976_s26 }
 0x161   : > { %s2580_s26 = smov %s2089_s14  ;;  %s2581_s27 = smov %s1984_s28 }
 0x162   : > { %s2582_s28 = smov %s2584_s9  ;;  %19 = sbr.rel (!%p17_p5) target bundleno = 4 (0x4), region = 87 }
 0x169   :  { %1172 = vsyncpa [#allocation3], 1 }
 0x16a   :  { %1174 = vsyncpa [#allocation3 + $0x1], 1 }

</bundles_post_ra>
